<compile_context>
chip_gen: v5e
topology: v5e:2x2
jax: 0.10.0
libtpu: 0.0.40
codegen_flags: <defaults>
</compile_context>

<pallas_src>
import functools

import numpy as np
import jax
import jax.numpy as jnp
from jax import lax
from jax.experimental import pallas as pl
from jax.experimental.pallas import tpu as pltpu


# ----------------------------------------------------------------------------
# Pallas kernels: per output pixel, pick the complex value whose score
# (real part, or |x|^2) is maximal over the K window candidates.
# Candidates are streamed one at a time to keep the live vreg set small.
# ----------------------------------------------------------------------------
def _pool_select_kernel(vr_ref, vi_ref, or_ref, oi_ref, *, mode, K):
    # No padding mask: every candidate is valid.
    best_r = vr_ref[0]                    # (Bt, Lt)
    best_i = vi_ref[0]
    if mode == 'absolute':
        best_s = best_r * best_r + best_i * best_i
    for t in range(1, K):                 # K is small & static -> unrolled VPU selects
        r = vr_ref[t]
        im = vi_ref[t]
        if mode == 'absolute':
            sc = r * r + im * im          # squared magnitude (monotone in |x|)
            better = sc > best_s          # strict '>' => earliest window index wins ties
            best_s = jnp.where(better, sc, best_s)
        else:
            # 'magnitude' pools on x.real; 'conjugate' pools on conj(x).real == x.real.
            # Score IS the real part, so best_r doubles as the score accumulator.
            better = r > best_r
        best_r = jnp.where(better, r, best_r)
        best_i = jnp.where(better, im, best_i)
    or_ref[...] = best_r
    oi_ref[...] = best_i


def _pool_select_masked_kernel(vr_ref, vi_ref, msk_ref, or_ref, oi_ref, *, mode, K):
    # padding > 0: msk_ref block is (K, 1, Lt); 0.0 for valid, -inf for padded
    # window positions.  Broadcasts over the sublane (Bt) axis in-kernel.
    r = vr_ref[0]
    im = vi_ref[0]
    m = msk_ref[0]                        # (1, Lt)
    if mode == 'absolute':
        best_s = r * r + im * im + m
    else:
        best_s = r + m
    best_r = r
    best_i = im
    for t in range(1, K):
        r = vr_ref[t]
        im = vi_ref[t]
        m = msk_ref[t]
        sc = (r * r + im * im + m) if mode == 'absolute' else (r + m)
        better = sc > best_s
        best_s = jnp.where(better, sc, best_s)
        best_r = jnp.where(better, r, best_r)
        best_i = jnp.where(better, im, best_i)
    or_ref[...] = best_r
    oi_ref[...] = best_i


# ----------------------------------------------------------------------------
# Helpers
# ----------------------------------------------------------------------------
def _round_up(x, m):
    return (x + m - 1) // m * m


def _choose_tiles(B, L, K):
    """Pick (Bt, Lt) so the double-buffered block footprint stays ~<= 20 MiB."""
    Lt = min(_round_up(max(L, 1), 128), 2048)         # lane-dense, capped for pipelining
    # Per unit of Bt, bytes for one grid step (double-buffered in + out):
    #   inputs : 2 planes * K * Lt * 4 B * 2 buffers
    #   outputs: 2 planes *     Lt * 4 B * 2 buffers
    per_bt = 16 * Lt * (K + 1)
    budget = 20 * 1024 * 1024
    max_bt = max(8, (budget // per_bt) // 8 * 8)
    Bt = int(min(_round_up(max(B, 1), 8), max_bt, 512))
    return Bt, Lt


def _window_candidates(x, k, s, p, Ho, Wo):
    # x: (B, H, W) complex64 -> (K, B, Ho*Wo) complex64 (fused by XLA with the
    # real/imag split + pad below; pad value is irrelevant: masked in kernel).
    B, H, W = x.shape
    xp = jnp.pad(x, ((0, 0), (p, p), (p, p))) if p > 0 else x
    cands = []
    for di in range(k):
        for dj in range(k):
            patch = lax.slice(xp,
                              (0, di, dj),
                              (B, di + (Ho - 1) * s + 1, dj + (Wo - 1) * s + 1),
                              (1, s, s))
            cands.append(patch.reshape(B, Ho * Wo))
    return jnp.stack(cands, axis=0)


def _pad_mask(H, W, k, s, p, Ho, Wo, Lp):
    # Built in numpy at trace time (static shapes) -> constant, no runtime cost.
    ho = np.arange(Ho)
    wo = np.arange(Wo)
    rows = []
    for di in range(k):
        for dj in range(k):
            ih = ho * s + di - p
            iw = wo * s + dj - p
            valid = ((ih[:, None] >= 0) & (ih[:, None] < H) &
                     (iw[None, :] >= 0) & (iw[None, :] < W))
            rows.append(np.where(valid, 0.0, -np.inf).reshape(Ho * Wo))
    msk = np.stack(rows, axis=0).astype(np.float32)            # (K, L)
    msk = np.pad(msk, ((0, 0), (0, Lp - Ho * Wo)))             # pad cols with 0.0
    return jnp.asarray(msk)[:, None, :]                        # (K, 1, Lp)


# ----------------------------------------------------------------------------
# Public wrapper reproducing ComplexMaxPool2d.forward
# ----------------------------------------------------------------------------
def complex_max_pool2d(x, kernel_size=2, stride=2, padding=0, mode='magnitude'):
    assert mode in ('magnitude', 'conjugate', 'absolute')
    input_dtype = x.dtype
    x = x.astype(jnp.complex64)                       # x = x.type(torch.complex64)

    N, C, H, W = x.shape
    B = N * C
    k, s, p = kernel_size, stride, padding
    Ho = (H + 2 * p - k) // s + 1
    Wo = (W + 2 * p - k) // s + 1
    L = Ho * Wo
    K = k * k

    Bt, Lt = _choose_tiles(B, L, K)
    Bp = _round_up(B, Bt)
    Lp = _round_up(L, Lt)

    cand = _window_candidates(x.reshape(B, H, W), k, s, p, Ho, Wo)   # (K, B, L) c64
    pad = ((0, 0), (0, Bp - B), (0, Lp - L))
    vr = jnp.pad(jnp.real(cand).astype(jnp.float32), pad)            # (K, Bp, Lp)
    vi = jnp.pad(jnp.imag(cand).astype(jnp.float32), pad)

    grid = (Bp // Bt, Lp // Lt)
    in_spec = pl.BlockSpec((K, Bt, Lt), lambda i, j: (0, i, j))
    out_spec = pl.BlockSpec((Bt, Lt), lambda i, j: (i, j))

    if p > 0:
        msk = _pad_mask(H, W, k, s, p, Ho, Wo, Lp)                   # (K, 1, Lp)
        kernel = functools.partial(_pool_select_masked_kernel, mode=mode, K=K)
        in_specs = [in_spec, in_spec,
                    pl.BlockSpec((K, 1, Lt), lambda i, j: (0, 0, j))]
        args = (vr, vi, msk)
    else:
        # padding == 0 statically known: no mask stream, no `score + msk`.
        kernel = functools.partial(_pool_select_kernel, mode=mode, K=K)
        in_specs = [in_spec, in_spec]
        args = (vr, vi)

    out_r, out_i = pl.pallas_call(
        kernel,
        out_shape=(jax.ShapeDtypeStruct((Bp, Lp), jnp.float32),
                   jax.ShapeDtypeStruct((Bp, Lp), jnp.float32)),
        grid=grid,
        in_specs=in_specs,
        out_specs=(out_spec, out_spec),
        compiler_params=pltpu.CompilerParams(
            dimension_semantics=("parallel", "parallel"),
            vmem_limit_bytes=48 * 1024 * 1024),
    )(*args)

    pooled = lax.complex(out_r[:B, :L], out_i[:B, :L]).reshape(N, C, Ho, Wo)

    # pooled.type(input_type)
    if jnp.issubdtype(input_dtype, jnp.complexfloating):
        return pooled.astype(input_dtype)
    return jnp.real(pooled).astype(input_dtype)


# ----------------------------------------------------------------------------
# Pure-numpy reference (mirrors torch max_pool2d(return_indices) + gather)
# ----------------------------------------------------------------------------
def _reference_np(x, k, s, p, mode):
    x = np.asarray(x).astype(np.complex64)
    N, C, H, W = x.shape
    Ho = (H + 2 * p - k) // s + 1
    Wo = (W + 2 * p - k) // s + 1
    out = np.zeros((N, C, Ho, Wo), dtype=np.complex64)
    for n in range(N):
        for c in range(C):
            for i in range(Ho):
                for j in range(Wo):
                    best = 0.0 + 0.0j
                    best_score = -np.inf
                    for di in range(k):
                        for dj in range(k):
                            ih = i * s + di - p
                            iw = j * s + dj - p
                            if 0 <= ih < H and 0 <= iw < W:
                                v = x[n, c, ih, iw]
                                sc = abs(v) if mode == 'absolute' else v.real
                                if sc > best_score:
                                    best_score = sc
                                    best = v
                    out[n, c, i, j] = best
    return out


if __name__ == "__main__":
    key = jax.random.PRNGKey(0)
    kr, ki = jax.random.split(key)
    N, C, H, W = 2, 4, 16, 16
    x = (jax.random.normal(kr, (N, C, H, W), dtype=jnp.float32)
         + 1j * jax.random.normal(ki, (N, C, H, W), dtype=jnp.float32)).astype(jnp.complex64)

    ok = True
    # (kernel_size, stride, padding): default no-pad path + masked (padded) path.
    for (k, s, p) in ((2, 2, 0), (3, 2, 1)):
        Ho = (H + 2 * p - k) // s + 1
        Wo = (W + 2 * p - k) // s + 1
        for mode in ('magnitude', 'conjugate', 'absolute'):
            out = complex_max_pool2d(x, kernel_size=k, stride=s, padding=p, mode=mode)
            out = jax.block_until_ready(out)
            ref = _reference_np(np.asarray(x), k, s, p, mode)
            if out.shape != (N, C, Ho, Wo) or out.dtype != jnp.complex64:
                ok = False
            if not np.allclose(np.asarray(out), ref, atol=1e-5, rtol=1e-5):
                ok = False

    print("KERNEL_OK" if ok else "KERNEL_MISMATCH")
</pallas_src>

<mosaic_0001>
module attributes {stable_mosaic.version = 11 : i64} {
  func.func @_pool_select_kernel(%arg0: i32, %arg1: i32, %arg2: memref<4x8x128xf32, #tpu.memory_space<vmem>>, %arg3: memref<4x8x128xf32, #tpu.memory_space<vmem>>, %arg4: memref<8x128xf32, #tpu.memory_space<vmem>>, %arg5: memref<8x128xf32, #tpu.memory_space<vmem>>) attributes {dimension_semantics = [#tpu.dimension_semantics<parallel>, #tpu.dimension_semantics<parallel>], iteration_bounds = array<i64: 1, 1>, scalar_prefetch = 0 : i64, scratch_operands = 0 : i64, tpu.core_type = #tpu.core_type<tc>, window_params = [{transform_indices = @transform_0, window_bounds = array<i64: 4, 8, 128>}, {transform_indices = @transform_1, window_bounds = array<i64: 4, 8, 128>}, {transform_indices = @transform_2, window_bounds = array<i64: 8, 128>}, {transform_indices = @transform_3, window_bounds = array<i64: 8, 128>}]} {
    %c0 = arith.constant 0 : index
    %c0_0 = arith.constant 0 : index
    %c0_1 = arith.constant 0 : index
    %0 = vector.load %arg2[%c0, %c0_0, %c0_1] : memref<4x8x128xf32, #tpu.memory_space<vmem>>, vector<1x8x128xf32>
    %1 = vector.shape_cast %0 : vector<1x8x128xf32> to vector<8x128xf32>
    %c0_2 = arith.constant 0 : index
    %c0_3 = arith.constant 0 : index
    %c0_4 = arith.constant 0 : index
    %2 = vector.load %arg3[%c0_2, %c0_3, %c0_4] : memref<4x8x128xf32, #tpu.memory_space<vmem>>, vector<1x8x128xf32>
    %3 = vector.shape_cast %2 : vector<1x8x128xf32> to vector<8x128xf32>
    %c1 = arith.constant 1 : index
    %c0_5 = arith.constant 0 : index
    %c0_6 = arith.constant 0 : index
    %4 = vector.load %arg2[%c1, %c0_5, %c0_6] : memref<4x8x128xf32, #tpu.memory_space<vmem>>, vector<1x8x128xf32>
    %5 = vector.shape_cast %4 : vector<1x8x128xf32> to vector<8x128xf32>
    %c1_7 = arith.constant 1 : index
    %c0_8 = arith.constant 0 : index
    %c0_9 = arith.constant 0 : index
    %6 = vector.load %arg3[%c1_7, %c0_8, %c0_9] : memref<4x8x128xf32, #tpu.memory_space<vmem>>, vector<1x8x128xf32>
    %7 = vector.shape_cast %6 : vector<1x8x128xf32> to vector<8x128xf32>
    %8 = arith.cmpf ogt, %5, %1 : vector<8x128xf32>
    %9 = arith.select %8, %5, %1 : vector<8x128xi1>, vector<8x128xf32>
    %10 = arith.select %8, %7, %3 : vector<8x128xi1>, vector<8x128xf32>
    %c2 = arith.constant 2 : index
    %c0_10 = arith.constant 0 : index
    %c0_11 = arith.constant 0 : index
    %11 = vector.load %arg2[%c2, %c0_10, %c0_11] : memref<4x8x128xf32, #tpu.memory_space<vmem>>, vector<1x8x128xf32>
    %12 = vector.shape_cast %11 : vector<1x8x128xf32> to vector<8x128xf32>
    %c2_12 = arith.constant 2 : index
    %c0_13 = arith.constant 0 : index
    %c0_14 = arith.constant 0 : index
    %13 = vector.load %arg3[%c2_12, %c0_13, %c0_14] : memref<4x8x128xf32, #tpu.memory_space<vmem>>, vector<1x8x128xf32>
    %14 = vector.shape_cast %13 : vector<1x8x128xf32> to vector<8x128xf32>
    %15 = arith.cmpf ogt, %12, %9 : vector<8x128xf32>
    %16 = arith.select %15, %12, %9 : vector<8x128xi1>, vector<8x128xf32>
    %17 = arith.select %15, %14, %10 : vector<8x128xi1>, vector<8x128xf32>
    %c3 = arith.constant 3 : index
    %c0_15 = arith.constant 0 : index
    %c0_16 = arith.constant 0 : index
    %18 = vector.load %arg2[%c3, %c0_15, %c0_16] : memref<4x8x128xf32, #tpu.memory_space<vmem>>, vector<1x8x128xf32>
    %19 = vector.shape_cast %18 : vector<1x8x128xf32> to vector<8x128xf32>
    %c3_17 = arith.constant 3 : index
    %c0_18 = arith.constant 0 : index
    %c0_19 = arith.constant 0 : index
    %20 = vector.load %arg3[%c3_17, %c0_18, %c0_19] : memref<4x8x128xf32, #tpu.memory_space<vmem>>, vector<1x8x128xf32>
    %21 = vector.shape_cast %20 : vector<1x8x128xf32> to vector<8x128xf32>
    %22 = arith.cmpf ogt, %19, %16 : vector<8x128xf32>
    %23 = arith.select %22, %19, %16 : vector<8x128xi1>, vector<8x128xf32>
    %24 = arith.select %22, %21, %17 : vector<8x128xi1>, vector<8x128xf32>
    %c0_20 = arith.constant 0 : index
    %c0_21 = arith.constant 0 : index
    %25 = vector.load %arg4[%c0_20, %c0_21] : memref<8x128xf32, #tpu.memory_space<vmem>>, vector<8x128xf32>
    tpu.vector_store %arg4[%c0_20, %c0_21], %23 {strides = array<i32>} : memref<8x128xf32, #tpu.memory_space<vmem>>, vector<8x128xf32>,
    %c0_22 = arith.constant 0 : index
    %c0_23 = arith.constant 0 : index
    %26 = vector.load %arg5[%c0_22, %c0_23] : memref<8x128xf32, #tpu.memory_space<vmem>>, vector<8x128xf32>
    tpu.vector_store %arg5[%c0_22, %c0_23], %24 {strides = array<i32>} : memref<8x128xf32, #tpu.memory_space<vmem>>, vector<8x128xf32>,
    return
  }
  func.func @transform_0(%arg0: i32, %arg1: i32) -> (i32, i32, i32) {
    %c0_i32 = arith.constant 0 : i32
    %c0_i32_0 = arith.constant 0 : i32
    return %c0_i32, %arg0, %arg1 : i32, i32, i32
  }
  func.func @transform_1(%arg0: i32, %arg1: i32) -> (i32, i32, i32) {
    %c0_i32 = arith.constant 0 : i32
    %c0_i32_0 = arith.constant 0 : i32
    return %c0_i32, %arg0, %arg1 : i32, i32, i32
  }
  func.func @transform_2(%arg0: i32, %arg1: i32) -> (i32, i32) {
    %c0_i32 = arith.constant 0 : i32
    return %arg0, %arg1 : i32, i32
  }
  func.func @transform_3(%arg0: i32, %arg1: i32) -> (i32, i32) {
    %c0_i32 = arith.constant 0 : i32
    return %arg0, %arg1 : i32, i32
  }
}

</mosaic_0001>

<bundles_post_ra>
// kernel: tpu_custom_call.1
= control target key start
LH: loop header
LB: loop body
LE: loop exit
PB: predicated region body
PF: predicated region fallthrough
CT: control target
= control target key end

     0   :  { %9 = vsyncpa [#allocation3], 0  ;;  %s254_s0 = inlined_call_operand.hbm [shape: f32[4,8,128], index: 0, kind: input, shape index: {}]   ;;  %s255_s1 = inlined_call_operand.hbm [shape: f32[4,8,128], index: 1, kind: input, shape index: {}]   ;;  %s256_s2 = inlined_call_operand.hbm [shape: f32[8,128], index: 2, kind: output, shape index: {0}]   ;;  %s257_s3 = inlined_call_operand.hbm [shape: f32[8,128], index: 3, kind: output, shape index: {1}]  }
   0x1   :  { %10 = vsyncpa [#allocation6], 0 }
   0x2   :  { %11 = vsyncpa [#allocation4], 0 }
   0x3   :  { %12 = vsyncpa [#allocation9], 0  ;;  %s17_s14 = sshll.u32 %s254_s0, 4  ;;  %s216_s15 = smov [#allocation2]   ;;  %s18_s14 = int_to_ptr.hbm [resolvable:$true] %s17_s14 }
   0x4   :  { %s19_s16 = sshll.u32 %s216_s15, 4  ;;  %s30_s19 = sshll.u32 %s255_s1, 4  ;;  %s20_s16 = int_to_ptr.vmem [resolvable:$true] %s19_s16  ;;  %s31_s19 = int_to_ptr.hbm [resolvable:$true] %s30_s19 }
   0x5   :  { %s217_s20 = smov 128   ;;  %s218_s21 = smov 8  }
   0x6   :  { %25 = dma.hbm_to_vmem [thread:$0]  %s18_s14, 512, %s20_s16, [#allocation3], %s217_s20, %s217_s20, %s218_s21  }
   0x7   :  { %s219_s22 = smov [#allocation5]  }
   0x8   :  { %s32_s23 = sshll.u32 %s219_s22, 4  ;;  %s33_s23 = int_to_ptr.vmem [resolvable:$true] %s32_s23 }
   0x9   :  { %38 = dma.hbm_to_vmem [thread:$0]  %s31_s19, 512, %s33_s23, [#allocation6], %s217_s20, %s217_s20, %s218_s21  }
   0xa   :  { %208 = dma.done.wait [#allocation3], 512  }
   0xb   :  { %209 = vsyncadd [#allocation3], 4294966784 }
   0xc   :  { %210 = dma.done.wait [#allocation6], 512  }
   0xd   :  { %211 = vsyncadd [#allocation6], 4294966784  ;;  %v47_v0 = vld [vmem:[#allocation2] sm:$0xff]  ;;  %v50_v1 = vld [vmem:[#allocation2 + $0x8] sm:$0xff]  ;;  %s220_s0 = smov [#allocation7]   ;;  %s79_s26 = sshll.u32 %s256_s2, 4  ;;  %s80_s26 = int_to_ptr.hbm [resolvable:$true] %s79_s26 }
   0xe   :  { %v57_v2 = vld [vmem:[#allocation2 + $0x10] sm:$0xff]  ;;  %vm53_vm0 = vcmp.gt.f32.partialorder %v50_v1, %v47_v0  ;;  %v48_v3 = vld [vmem:[#allocation5] sm:$0xff]  ;;  %v52_v4 = vld [vmem:[#allocation5 + $0x8] sm:$0xff]  ;;  %s77_s1 = sshll.u32 %s220_s0, 4  ;;  %s221_s27 = smov [#allocation8]   ;;  %s78_s1 = int_to_ptr.vmem [resolvable:$true] %s77_s1 }
   0xf   :  { %v54_v5 = vsel %vm53_vm0, %v50_v1, %v47_v0  ;;  %v64_v6 = vld [vmem:[#allocation2 + $0x18] sm:$0xff]  ;;  %v55_v7 = vsel %vm53_vm0, %v52_v4, %v48_v3  ;;  %v59_v8 = vld [vmem:[#allocation5 + $0x10] sm:$0xff]  ;;  %s88_s28 = sshll.u32 %s221_s27, 4  ;;  %s90_s4 = sshll.u32 %s257_s3, 4  ;;  %s89_s28 = int_to_ptr.vmem [resolvable:$true] %s88_s28  ;;  %s91_s4 = int_to_ptr.hbm [resolvable:$true] %s90_s4 }
  0x10   :  { %vm60_vm1 = vcmp.gt.f32.partialorder %v57_v2, %v54_v5  ;;  %v66_v9 = vld [vmem:[#allocation5 + $0x18] sm:$0xff] }
  0x11   :  { %v61_v10 = vsel %vm60_vm1, %v57_v2, %v54_v5  ;;  %v62_v11 = vsel %vm60_vm1, %v59_v8, %v55_v7 }
  0x12   :  { %vm67_vm2 = vcmp.gt.f32.partialorder %v64_v6, %v61_v10 }
  0x13   :  { %v68_v12 = vsel %vm67_vm2, %v64_v6, %v61_v10  ;;  %v69_v13 = vsel %vm67_vm2, %v66_v9, %v62_v11 }
  0x14   :  { %70 = vst [vmem:[#allocation7] sm:$0xff] %v68_v12 }
  0x15   :  { %71 = vst [vmem:[#allocation8] sm:$0xff] %v69_v13  ;;  %82 = dma.vmem_to_hbm [thread:$0]  %s78_s1, 128, %s80_s26, [#allocation4]  }
  0x16   :  { %93 = dma.vmem_to_hbm [thread:$0]  %s89_s28, 128, %s91_s4, [#allocation9]  }
  0x17   :  { %212 = dma.done.wait [#allocation4], 128  }
  0x18   :  { %213 = vsyncadd [#allocation4], 4294967168 }
  0x19   :  { %214 = dma.done.wait [#allocation9], 128  }
  0x1a   :  { %215 = vsyncadd [#allocation9], 4294967168 }
  0x1b   :  { %102 = vsyncpa [#allocation3], 1 }
  0x1c   :  { %103 = vsyncpa [#allocation6], 1 }
  0x1d   :  { %104 = vsyncpa [#allocation4], 1 }
  0x1e   :  { %105 = vsyncpa [#allocation9], 1 }

</bundles_post_ra>
